<compile_context>
chip_gen: v7x
topology: tpu7x:2x2x1
jax: 0.10.0
libtpu: 0.0.40
codegen_flags: <defaults>
</compile_context>

<pallas_src>
import functools

import jax
import jax.numpy as jnp
from jax.experimental import pallas as pl
from jax.experimental.pallas import tpu as pltpu

_VMEM_LIMIT_BYTES = 32 * 1024 * 1024  # safe on v5e/v6e/v7x with these tile budgets


# ----------------------------------------------------------------------------
# Tile-size helpers
# ----------------------------------------------------------------------------
def _lane_tile(L):
    """Largest multiple-of-128 tile that divides L (capped), else full extent."""
    for cand in (2048, 1024, 512, 256, 128):
        if cand <= L and L % cand == 0:
            return cand
    return L  # L < 128 or no nice divisor -> full extent block (allowed)


def _batch_tile(B, C, tL, itemsize, budget=2 * 1024 * 1024):
    """Batch tile for the pooling pass: multiple of 8 (keeps the (tB, C) gate
    block sublane-aligned), divides B, and keeps the x tile under `budget`."""
    for cand in (64, 32, 16, 8):
        if cand <= B and B % cand == 0 and cand * C * tL * itemsize <= budget:
            return cand
    return B  # small-B fallback: full extent


def _row_tile(R, tL, itemsize, budget=4 * 1024 * 1024):
    """Row tile for the scaling pass over the flattened (B*C, L) view."""
    for cand in (1024, 512, 256, 128, 64, 32, 16, 8):
        if cand <= R and R % cand == 0 and cand * tL * itemsize <= budget:
            return cand
    return R  # small-R fallback: full extent


# ----------------------------------------------------------------------------
# Pass 1: global average pool over L + gate MLP (Linear -> ReLU -> Linear -> Sigmoid)
# ----------------------------------------------------------------------------
def _se_gate_kernel(x_ref, w1t_ref, w2t_ref, gate_ref, acc_ref, *, inv_l):
    # x_ref:    (tB, C, tL) input tile
    # w1t_ref:  (C, H)      resident W1.T
    # w2t_ref:  (H, C)      resident W2.T
    # gate_ref: (tB, C)     sigmoid gate output (written once, at last L step)
    # acc_ref:  (tB, C)     f32 running sum over L
    l_idx = pl.program_id(1)

    @pl.when(l_idx == 0)
    def _init():
        acc_ref[...] = jnp.zeros_like(acc_ref)

    # Accumulate the pooled sum in f32 regardless of input dtype.
    acc_ref[...] += jnp.sum(x_ref[...].astype(jnp.float32), axis=-1)

    @pl.when(l_idx == pl.num_programs(1) - 1)
    def _finalize():
        y = acc_ref[...] * inv_l  # mean over full length
        h = jnp.dot(y, w1t_ref[...], preferred_element_type=jnp.float32)
        h = jnp.maximum(h, 0.0)
        s = jnp.dot(h, w2t_ref[...], preferred_element_type=jnp.float32)
        gate_ref[...] = jax.nn.sigmoid(s).astype(gate_ref.dtype)


# ----------------------------------------------------------------------------
# Pass 2: rescale rows of the flattened (B*C, L) input by the per-row gate
# ----------------------------------------------------------------------------
def _se_scale_kernel(x_ref, gate_ref, o_ref):
    x = x_ref[...]                           # (tR, tL), kept in input dtype
    g = gate_ref[...].astype(x.dtype)        # (tR, 1) broadcast over lanes
    o_ref[...] = (x * g).astype(o_ref.dtype)


# ----------------------------------------------------------------------------
# Wrapper
# ----------------------------------------------------------------------------
def squeeze_excite_block(x, w1, w2):
    """x: (B, C, L). w1: (H, C), w2: (C, H) in PyTorch nn.Linear weight layout."""
    B, C, L = x.shape
    H = w1.shape[0]
    itemsize = jnp.dtype(x.dtype).itemsize

    w1t = jnp.transpose(w1)  # (C, H)
    w2t = jnp.transpose(w2)  # (H, C)

    tL = _lane_tile(L)
    tB = _batch_tile(B, C, tL, itemsize)

    # ---- Pass 1: pooled mean + gate MLP -> (B, C) f32 gate ----
    gate = pl.pallas_call(
        functools.partial(_se_gate_kernel, inv_l=1.0 / L),
        out_shape=jax.ShapeDtypeStruct((B, C), jnp.float32),
        grid=(B // tB, L // tL),
        in_specs=[
            pl.BlockSpec((tB, C, tL), lambda b, l: (b, 0, l)),
            pl.BlockSpec((C, H), lambda b, l: (0, 0)),  # weights stay resident
            pl.BlockSpec((H, C), lambda b, l: (0, 0)),  # weights stay resident
        ],
        out_specs=pl.BlockSpec((tB, C), lambda b, l: (b, 0)),
        scratch_shapes=[pltpu.VMEM((tB, C), jnp.float32)],
        compiler_params=pltpu.CompilerParams(
            dimension_semantics=("parallel", "arbitrary"),
            vmem_limit_bytes=_VMEM_LIMIT_BYTES,
        ),
    )(x, w1t, w2t)

    # ---- Pass 2: lane-dense per-row rescale over the flattened view ----
    R = B * C
    tR = _row_tile(R, tL, itemsize)
    x2 = x.reshape(R, L)        # contiguous leading-dim merge (metadata only)
    gate2 = gate.reshape(R, 1)  # tiny (B*C, 1) gate column

    out2 = pl.pallas_call(
        _se_scale_kernel,
        out_shape=jax.ShapeDtypeStruct((R, L), x.dtype),
        grid=(R // tR, L // tL),
        in_specs=[
            pl.BlockSpec((tR, tL), lambda r, l: (r, l)),
            pl.BlockSpec((tR, 1), lambda r, l: (r, 0)),
        ],
        out_specs=pl.BlockSpec((tR, tL), lambda r, l: (r, l)),
        compiler_params=pltpu.CompilerParams(
            dimension_semantics=("parallel", "parallel"),
            vmem_limit_bytes=_VMEM_LIMIT_BYTES,
        ),
    )(x2, gate2)

    return out2.reshape(B, C, L)


# ----------------------------------------------------------------------------
# Pure-JAX reference
# ----------------------------------------------------------------------------
def _reference(x, w1, w2):
    y = jnp.mean(x, axis=-1)
    h = jnp.maximum(y @ w1.T, 0.0)
    s = jax.nn.sigmoid(h @ w2.T)
    return x * s[:, :, None]


if __name__ == "__main__":
    B, C, L = 2, 32, 16
    reduction = 16
    H = C // reduction  # = 2

    key = jax.random.PRNGKey(0)
    kx, k1, k2 = jax.random.split(key, 3)
    x = jax.random.normal(kx, (B, C, L), dtype=jnp.float32)
    # Same shapes as nn.Linear(C, H, bias=False) / nn.Linear(H, C, bias=False).
    w1 = jax.random.normal(k1, (H, C), dtype=jnp.float32) * 0.1
    w2 = jax.random.normal(k2, (C, H), dtype=jnp.float32) * 0.1

    out = squeeze_excite_block(x, w1, w2)
    out = jax.block_until_ready(out)

    ref = _reference(x, w1, w2)
    assert out.shape == (B, C, L)
    assert jnp.allclose(out, ref, atol=1e-5, rtol=1e-5), "mismatch vs reference"
    print("KERNEL_OK")
</pallas_src>

<mosaic_0001>
module attributes {stable_mosaic.version = 11 : i64} {
  func.func @_se_gate_kernel(%arg0: i32, %arg1: i32, %arg2: memref<2x32x16xf32, #tpu.memory_space<vmem>>, %arg3: memref<32x2xf32, #tpu.memory_space<vmem>>, %arg4: memref<2x32xf32, #tpu.memory_space<vmem>>, %arg5: memref<2x32xf32, #tpu.memory_space<vmem>>, %arg6: memref<2x32xf32, #tpu.memory_space<vmem>>) attributes {dimension_semantics = [#tpu.dimension_semantics<parallel>, #tpu.dimension_semantics<arbitrary>], iteration_bounds = array<i64: 1, 1>, scalar_prefetch = 0 : i64, scratch_operands = 1 : i64, tpu.core_type = #tpu.core_type<tc>, window_params = [{transform_indices = @transform_0, window_bounds = array<i64: 2, 32, 16>}, {pipeline_mode = #tpu.pipeline_mode<synchronous>, transform_indices = @transform_1, window_bounds = array<i64: 32, 2>}, {pipeline_mode = #tpu.pipeline_mode<synchronous>, transform_indices = @transform_2, window_bounds = array<i64: 2, 32>}, {transform_indices = @transform_3, window_bounds = array<i64: 2, 32>}]} {
    %c0_i32 = arith.constant 0 : i32
    %0 = arith.cmpi eq, %arg1, %c0_i32 : i32
    %1 = arith.extui %0 : i1 to i32
    %c0_i32_0 = arith.constant 0 : i32
    %2 = arith.cmpi ne, %1, %c0_i32_0 : i32
    scf.if %2 {
      %cst_9 = arith.constant 0.000000e+00 : f32
      %11 = vector.broadcast %cst_9 : f32 to vector<2x32xf32>
      %c0_10 = arith.constant 0 : index
      %c0_11 = arith.constant 0 : index
      %12 = vector.load %arg6[%c0_10, %c0_11] : memref<2x32xf32, #tpu.memory_space<vmem>>, vector<2x32xf32>
      tpu.vector_store %arg6[%c0_10, %c0_11], %11 {strides = array<i32>} : memref<2x32xf32, #tpu.memory_space<vmem>>, vector<2x32xf32>,
    } else {
    }
    %c0 = arith.constant 0 : index
    %c0_1 = arith.constant 0 : index
    %3 = vector.load %arg6[%c0, %c0_1] : memref<2x32xf32, #tpu.memory_space<vmem>>, vector<2x32xf32>
    %c0_2 = arith.constant 0 : index
    %c0_3 = arith.constant 0 : index
    %c0_4 = arith.constant 0 : index
    %4 = vector.load %arg2[%c0_2, %c0_3, %c0_4] : memref<2x32x16xf32, #tpu.memory_space<vmem>>, vector<2x32x16xf32>
    %cst = arith.constant dense<0.000000e+00> : vector<2x32xf32>
    %5 = vector.multi_reduction <add>, %4, %cst [2] : vector<2x32x16xf32> to vector<2x32xf32>
    %6 = arith.addf %3, %5 : vector<2x32xf32>
    %c0_5 = arith.constant 0 : index
    %c0_6 = arith.constant 0 : index
    %7 = vector.load %arg6[%c0_5, %c0_6] : memref<2x32xf32, #tpu.memory_space<vmem>>, vector<2x32xf32>
    tpu.vector_store %arg6[%c0_5, %c0_6], %6 {strides = array<i32>} : memref<2x32xf32, #tpu.memory_space<vmem>>, vector<2x32xf32>,
    %c0_i32_7 = arith.constant 0 : i32
    %8 = arith.cmpi eq, %arg1, %c0_i32_7 : i32
    %9 = arith.extui %8 : i1 to i32
    %c0_i32_8 = arith.constant 0 : i32
    %10 = arith.cmpi ne, %9, %c0_i32_8 : i32
    scf.if %10 {
      %c0_9 = arith.constant 0 : index
      %c0_10 = arith.constant 0 : index
      %11 = vector.load %arg6[%c0_9, %c0_10] : memref<2x32xf32, #tpu.memory_space<vmem>>, vector<2x32xf32>
      %cst_11 = arith.constant 6.250000e-02 : f32
      %12 = vector.broadcast %cst_11 : f32 to vector<2x32xf32>
      %13 = arith.mulf %11, %12 : vector<2x32xf32>
      %c0_12 = arith.constant 0 : index
      %c0_13 = arith.constant 0 : index
      %14 = vector.load %arg3[%c0_12, %c0_13] : memref<32x2xf32, #tpu.memory_space<vmem>>, vector<32x2xf32>
      %cst_14 = arith.constant dense<0.000000e+00> : vector<2x2xf32>
      %15 = tpu.matmul %13, %14, %cst_14 {dimension_numbers = #tpu.dot_dimension_numbers<[1], [0], [0], [1], [0, 0, 1, 1], [], []>} : vector<2x32xf32>, vector<32x2xf32>, vector<2x2xf32> -> vector<2x2xf32>
      %cst_15 = arith.constant 0.000000e+00 : f32
      %16 = vector.broadcast %cst_15 : f32 to vector<2x2xf32>
      %17 = arith.maximumf %15, %16 : vector<2x2xf32>
      %c0_16 = arith.constant 0 : index
      %c0_17 = arith.constant 0 : index
      %18 = vector.load %arg4[%c0_16, %c0_17] : memref<2x32xf32, #tpu.memory_space<vmem>>, vector<2x32xf32>
      %cst_18 = arith.constant dense<0.000000e+00> : vector<2x32xf32>
      %19 = tpu.matmul %17, %18, %cst_18 {dimension_numbers = #tpu.dot_dimension_numbers<[1], [0], [0], [1], [0, 0, 1, 1], [], []>} : vector<2x2xf32>, vector<2x32xf32>, vector<2x32xf32> -> vector<2x32xf32>
      %20 = arith.negf %19 : vector<2x32xf32>
      %21 = math.exp %20 : vector<2x32xf32>
      %cst_19 = arith.constant 1.000000e+00 : f32
      %22 = vector.broadcast %cst_19 : f32 to vector<2x32xf32>
      %23 = arith.addf %22, %21 : vector<2x32xf32>
      %24 = arith.divf %22, %23 : vector<2x32xf32>
      %c0_20 = arith.constant 0 : index
      %c0_21 = arith.constant 0 : index
      %25 = vector.load %arg5[%c0_20, %c0_21] : memref<2x32xf32, #tpu.memory_space<vmem>>, vector<2x32xf32>
      tpu.vector_store %arg5[%c0_20, %c0_21], %24 {strides = array<i32>} : memref<2x32xf32, #tpu.memory_space<vmem>>, vector<2x32xf32>,
    } else {
    }
    return
  }
  func.func @transform_0(%arg0: i32, %arg1: i32) -> (i32, i32, i32) {
    %c0_i32 = arith.constant 0 : i32
    %c0_i32_0 = arith.constant 0 : i32
    return %arg0, %c0_i32, %arg1 : i32, i32, i32
  }
  func.func @transform_1(%arg0: i32, %arg1: i32) -> (i32, i32) {
    %c0_i32 = arith.constant 0 : i32
    %c0_i32_0 = arith.constant 0 : i32
    %c0_i32_1 = arith.constant 0 : i32
    return %c0_i32, %c0_i32_0 : i32, i32
  }
  func.func @transform_2(%arg0: i32, %arg1: i32) -> (i32, i32) {
    %c0_i32 = arith.constant 0 : i32
    %c0_i32_0 = arith.constant 0 : i32
    %c0_i32_1 = arith.constant 0 : i32
    return %c0_i32, %c0_i32_0 : i32, i32
  }
  func.func @transform_3(%arg0: i32, %arg1: i32) -> (i32, i32) {
    %c0_i32 = arith.constant 0 : i32
    %c0_i32_0 = arith.constant 0 : i32
    return %arg0, %c0_i32 : i32, i32
  }
}

</mosaic_0001>

<bundles_post_ra>
// kernel: tpu_custom_call.1
= control target key start
LH: loop header
LB: loop body
LE: loop exit
PB: predicated region body
PF: predicated region fallthrough
CT: control target
= control target key end

     0   :  { %vm30_vm0 = vcmask 130048   ;;  %s450_s0 = inlined_call_operand.vmem [shape: f32[2,32,16], index: 0, kind: input, shape index: {}]   ;;  %s451_s1 = inlined_call_operand.vmem [shape: f32[32,2], index: 1, kind: input, shape index: {}]   ;;  %s452_s2 = inlined_call_operand.vmem [shape: f32[2,32], index: 2, kind: input, shape index: {}]   ;;  %s453_s3 = inlined_call_operand.hbm [shape: f32[2,32], index: 3, kind: output, shape index: {}]  }
   0x1   :  { %v26_v0 = vld [vmem:[%s450_s0 + $0x20] sm:$0xff]  ;;  %v27_v2 = vld [vmem:[%s450_s0 + $0x28] sm:$0xff] }
   0x2   :  { %v22_v1 = vld [vmem:[%s450_s0] sm:$0xff]  ;;  %v43_v3 = vsel %vm30_vm0, %v26_v0, 0.0  ;;  %v23_v5 = vld [vmem:[%s450_s0 + $0x8] sm:$0xff]  ;;  %v46_v6 = vsel %vm30_vm0, %v27_v2, 0.0 }
   0x3   :  { %v31_v4 = vsel %vm30_vm0, %v22_v1, 0.0  ;;  %44 = vadd.xlane.f32.xlu1 %v43_v3  ;;  %v34_v7 = vsel %vm30_vm0, %v23_v5, 0.0 }
   0x4   :  { %32 = vadd.xlane.f32.xlu0 %v31_v4 }
   0x5   :  { %8 = vsyncpa [#allocation4], 0  ;;  %v28_v8 = vld [vmem:[%s450_s0 + $0x30] sm:$0xff]  ;;  %v29_v12 = vld [vmem:[%s450_s0 + $0x38] sm:$0xff]  ;;  %vm19_vm1 = vcmask 254976   ;;  %v364_v16 = vmov 0.0   ;;  %v63_v24 = vlaneseq }
   0x6   :  { %v24_v9 = vld [vmem:[%s450_s0 + $0x10] sm:$0xff]  ;;  %v49_v10 = vsel %vm30_vm0, %v28_v8, 0.0  ;;  %v25_v13 = vld [vmem:[%s450_s0 + $0x18] sm:$0xff]  ;;  %v52_v14 = vsel %vm30_vm0, %v29_v12, 0.0  ;;  %20 = vst.msk [vmem:[#allocation2] sm:$0x3] %vm19_vm1, %v364_v16  ;;  %321 = vmatprep.subr.mxu1 %v364_v16 }
   0x7   :  { %47 = vadd.xlane.f32.xlu1 %v46_v6  ;;  %v37_v11 = vsel %vm30_vm0, %v24_v9, 0.0  ;;  %v40_v15 = vsel %vm30_vm0, %v25_v13, 0.0  ;;  %v120_v17 = vld [vmem:[%s451_s1] sm:$0xff]  ;;  %v121_v18 = vld [vmem:[%s451_s1 + $0x8] sm:$0xff]  ;;  %v122_v19 = vld [vmem:[%s451_s1 + $0x10] sm:$0xff]  ;;  %v365_v20 = vmov 0.0|0.0  }
   0x8   :  { %35 = vadd.xlane.f32.xlu0 %v34_v7  ;;  %326 = vmatprep.subr.bf16.mxu0 %v365_v20  ;;  %v327_v21 = vpack.c.bf16 %v121_v18, %v120_v17  ;;  %v123_v22 = vld [vmem:[%s451_s1 + $0x18] sm:$0xff]  ;;  %vm366_vm2 = vmmov 0   ;;  %v64_v25 = vand.u32 127, %v63_v24  ;;  %v66_v30 = vshrl.u32 %v63_v24, 7  ;;  %v199_v61 = vld [vmem:[%s452_s2] sm:$0x3] }
   0x9   :  { %v330_v23 = vpack.c.bf16 %v123_v22, %v122_v19  ;;  %318 = vmatprep.mubr.msk.f32.mxu0 %vm366_vm2, %v364_v16  ;;  %323 = vmatprep.mubr.msk.f32.mxu1 %vm366_vm2, %v364_v16  ;;  %vm74_vm3 = vcmask 130112   ;;  %vm81_vm4 = vcmask 195712   ;;  %vm88_vm5 = vcmask 261312   ;;  %s367_s9 = smov [#allocation3]  }
   0xa   :  { %328 = vmatpush3.bf16.msra.mxu0 %v327_v21  ;;  %v69_v28 = vadd.s32 4294967288, %v64_v25  ;;  %v76_v29 = vadd.s32 4294967280, %v64_v25  ;;  %v83_v34 = vadd.s32 4294967272, %v64_v25  ;;  %v67_v36 = vsub.s32 %v64_v25, %v66_v30  ;;  %s291_s10 = sshll.u32 %s367_s9, 4  ;;  %s292_s10 = int_to_ptr.vmem [resolvable:$true] %s291_s10 }
   0xb   :  { %50 = vadd.xlane.f32.xlu1 %v49_v10  ;;  %329 = vmatprep.subr.bf16.mxu0 %v365_v20  ;;  %vm109_vm6 = vcmask 1041409   ;;  %vm124_vm7 = vcmask 261120   ;;  %vm204_vm8 = vcmask 1041408   ;;  %vm200_vm9 = vcmask 15360   ;;  %s340_s2 = scalar_lea.vmem %s292_s10, 32  ;;  %p345_p1 = scmp.lt.s32.totalorder %s292_s10, %s292_s10 }
   0xc   :  { %38 = vadd.xlane.f32.xlu0 %v37_v11  ;;  %v72_v33 = vsub.s32 %v69_v28, %v66_v30  ;;  %v79_v35 = vsub.s32 %v76_v29, %v66_v30  ;;  %v86_v41 = vsub.s32 %v83_v34, %v66_v30  ;;  %322 = vmatpush3.msk.msra.mxu1 %vm204_vm8, %v199_v61  ;;  %p341_p0 = scmp.ne.s32.totalorder %s292_s10, %s340_s2  ;;  %p346_p2 = scmp.lt.s32.totalorder %s340_s2, %s340_s2 }
   0xd   :  { %v21_v54 = vld [vmem:[#allocation2] sm:$0x3] }
   0xe   :  { %331 = vmatpush3.bf16.msra.mxu0 %v330_v23  ;;  %p347_p3 = por %p346_p2, %p345_p1 }
   0xf   :  { %53 = vadd.xlane.f32.xlu1 %v52_v14 }
  0x10   :  { %41 = vadd.xlane.f32.xlu0 %v40_v15  ;;  %p348_p4 = pnand %p347_p3, %p341_p0 }
  0x90   :  { %v45_v26 = vpop.xlane.xlu1 %44 }
  0x91   :  { %v33_v27 = vpop.xlane.xlu0 %32  ;;  %v93_v44 = vrot.slane %v45_v26, %v67_v36 }
  0x92   :  { %v68_v45 = vrot.slane %v33_v27, %v67_v36 }
  0x94   :  { %v48_v31 = vpop.xlane.xlu1 %47 }
  0x95   :  { %v36_v32 = vpop.xlane.xlu0 %35  ;;  %v97_v39 = vrot.slane %v48_v31, %v72_v33 }
  0x96   :  { %v73_v40 = vrot.slane %v36_v32, %v72_v33 }
  0x97   :  { %v98_v48 = vsel %vm74_vm3, %v97_v39, %v93_v44 }
  0x98   :  { %v51_v37 = vpop.xlane.xlu1 %50  ;;  %v75_v49 = vsel %vm74_vm3, %v73_v40, %v68_v45 }
  0x99   :  { %v39_v38 = vpop.xlane.xlu0 %38  ;;  %v102_v42 = vrot.slane %v51_v37, %v79_v35 }
  0x9a   :  { %v80_v43 = vrot.slane %v39_v38, %v79_v35 }
  0x9b   :  { %v103_v52 = vsel %vm81_vm4, %v102_v42, %v98_v48 }
  0x9c   :  { %v54_v46 = vpop.xlane.xlu1 %53  ;;  %v82_v53 = vsel %vm81_vm4, %v80_v43, %v75_v49 }
  0x9d   :  { %v42_v47 = vpop.xlane.xlu0 %41  ;;  %v107_v50 = vrot.slane %v54_v46, %v86_v41 }
  0x9e   :  { %v87_v51 = vrot.slane %v42_v47, %v86_v41 }
  0x9f   :  { %v108_v55 = vsel %vm88_vm5, %v107_v50, %v103_v52 }
  0xa0   :  { %v89_v56 = vsel %vm88_vm5, %v87_v51, %v82_v53 }
  0xa1   :  { %v110_v57 = vsel %vm109_vm6, %v108_v55, %v89_v56 }
  0xa2   :  { %v112_v58 = vadd.f32 %v110_v57, %v21_v54 }
  0xa4   :  { %114 = vst.msk [vmem:[#allocation2] sm:$0x3] %vm19_vm1, %v112_v58 }
  0xab   :  { %v118_v59 = vld [vmem:[#allocation2] sm:$0x3] }
  0xac   :  { %v119_v60 = vmul.f32 0.0625, %v118_v59 }
  0xae   :  { %319 = vmatmul.mubr.msk.f32.vlgmr.msra.gmra.mrb[0].mxu0 %vm124_vm7, %v119_v60 }
 0x181   :  { %v194_v62 = vpop.f32.mrb[0].mxu0 }
 0x182   :  { %v198_v63 = vmax.f32 %v194_v62, 0.0  ;;  %v320_v0 = vpop.f32.mrb[1].mxu0 }
 0x184   :  { %324 = vmatmul.mubr.msk.f32.vlgmr.msra.gmra.mrb[0].mxu1 %vm200_vm9, %v198_v63 }
 0x257   :  { %v274_v1 = vpop.f32.mrb[0].mxu1 }
 0x258   :  { %v302_v2 = vmul.f32 -1.442695, %v274_v1  ;;  %v325_v3 = vpop.f32.mrb[1].mxu1 }
 0x25a   :  { %336 = vpow2.f32 %v302_v2 }
 0x264   :  { %v337_v4 = vpop.eup %336 }
 0x265   :  { %v281_v5 = vadd.f32 1.0, %v337_v4 }
 0x267   :  { %338 = vrcp.f32 %v281_v5 }
 0x271   :  { %v339_v6 = vpop.eup %338 }
 0x272   :  { %284 = vst.msk [vmem:[#allocation3] sm:$0x3] %vm19_vm1, %v339_v6 }
 0x273   :  { %351 = shalt.err (!%p348_p4)
}
 0x274   :  { %s352_s13 = scalar_lea.hbm %s453_s3, 32 }
 0x275   :  { %p353_p5 = scmp.ne.s32.totalorder %s453_s3, %s352_s13  ;;  %p356_p6 = scmp.lt.u32.totalorder %s352_s13, %s453_s3 }
 0x277   :  { %p358_p7 = pnand %p356_p6, %p353_p5 }
 0x279   :  { %361 = shalt.err (!%p358_p7)
}
 0x27a   :  { %294 = dma.vmem_to_hbm [thread:$0]  %s292_s10, 32, %s453_s3, [#allocation4]  }
 0x27b   :  { %362 = dma.done.wait [#allocation4], 32  }
 0x27c   :  { %363 = vsyncadd [#allocation4], 4294967264 }
 0x27d   :  { %298 = vsyncpa [#allocation4], 1 }

</bundles_post_ra>
